<compile_context>
chip_gen: v7x
topology: tpu7x:2x2x1
jax: 0.10.0
libtpu: 0.0.40
codegen_flags: <defaults>
</compile_context>

<pallas_src>
import functools

import jax
import jax.numpy as jnp
from jax.experimental import pallas as pl
from jax.experimental.pallas import tpu as pltpu

N_PARTICLE = 1
N_DIMENSION = 2
NUM_HIDDEN_LAYERS = 4
HIDDEN = 64
IN_DIM = N_PARTICLE * N_DIMENSION                    # 2  (per cos / sin block)
IN_FEATS = 2 * IN_DIM + 1                            # cos + sin + t -> 5
OUT_FEATS = N_PARTICLE * N_DIMENSION                 # 2


def _tpu_generation():
    """Best-effort TPU generation number from the device kind string."""
    try:
        kind = jax.devices()[0].device_kind.lower()
    except Exception:  # pragma: no cover - defensive
        return 0
    for g in range(9, 1, -1):
        if (f"v{g}" in kind) or (f"tpu{g}" in kind):
            return g
    return 0


def pinn2d_kernel(s_ref, t_ref,
                  w_cos_ref, w_sin_ref, w_t_ref, b_in_ref,
                  w_h_ref, b_h_ref,
                  w_out_ref, b_out_ref,
                  o_ref, *, act_dtype):
    """Feature-major forward: activations are (features, TB)."""
    s = s_ref[...]                                   # (2,  TB) f32
    t = t_ref[...]                                   # (1,  TB) f32
    cos_s = jnp.cos(s)
    sin_s = jnp.sin(s)

    w_cos = w_cos_ref[...]                           # (64, 2) f32
    w_sin = w_sin_ref[...]                           # (64, 2) f32

    # ---- input layer: VPU broadcast-MACs (no lane concat, no K=5 MXU pass) ----
    pre = b_in_ref[...] + w_t_ref[...] * t           # (64,1)+(64,1)*(1,TB) -> (64,TB)
    for d in range(IN_DIM):
        pre = pre + w_cos[:, d:d + 1] * cos_s[d:d + 1, :]
        pre = pre + w_sin[:, d:d + 1] * sin_s[d:d + 1, :]
    x = jnp.tanh(pre.astype(act_dtype))              # (64, TB) act_dtype

    # ---- residual tanh hidden layers: x = tanh(W @ x + b) + x ----
    # MXU operands in mm_dtype, f32 accumulate; tanh + residual in act_dtype
    # (bf16 on v6e/v7x, f32 on v5e).  No named intermediate -> fewer live vregs.
    mm_dtype = w_h_ref.dtype
    for i in range(NUM_HIDDEN_LAYERS):
        pre_h = jnp.dot(w_h_ref[i], x.astype(mm_dtype),
                        preferred_element_type=jnp.float32) + b_h_ref[i]
        x = jnp.tanh(pre_h.astype(act_dtype)) + x

    # ---- output layer (no activation): (2,64)@(64,TB) -> lane-dense (2,TB) ----
    out = jnp.dot(w_out_ref[...], x.astype(mm_dtype),
                  preferred_element_type=jnp.float32) + b_out_ref[...]
    o_ref[...] = out.astype(o_ref.dtype)


def _choose_tile(batch, block_b, min_steps=2):
    """Lane-aligned batch tile; prefer >= min_steps grid steps (v7x 2-TC split)."""
    b_round = pl.cdiv(batch, 128) * 128              # 128-aligned batch
    tb = max(128, min(block_b, b_round))
    if b_round >= min_steps * 128:
        per_step = pl.cdiv(pl.cdiv(b_round, min_steps), 128) * 128
        tb = min(tb, per_step)
    b_pad = pl.cdiv(b_round, tb) * tb
    return tb, b_pad


def pinn2d_forward(t, samples_prior, params, *, block_b=4096,
                   use_bf16_matmul=True, use_bf16_act=None):
    """t: (B, 1), samples_prior: (B, 2)  ->  (B, 2)."""
    (w_cos, w_sin, w_t, b_in, w_h, b_h, w_out, b_out) = params
    batch = t.shape[0]

    # Per-generation elementwise dtype: bf16 tanh/residual only where the
    # VPU/EUP are bf16-native (v6e, v7x).  v5e keeps f32 elementwise.
    if use_bf16_act is None:
        use_bf16_act = _tpu_generation() >= 6
    act_dtype = jnp.bfloat16 if use_bf16_act else jnp.float32

    tb, b_pad = _choose_tile(batch, block_b)

    # Feature-major, batch-padded inputs (padded tail: cos(0)/sin(0)/t=0, finite).
    t_fm = jnp.pad(t.T.astype(jnp.float32), ((0, 0), (0, b_pad - batch)))
    s_fm = jnp.pad(samples_prior.T.astype(jnp.float32), ((0, 0), (0, b_pad - batch)))

    # MXU operand dtype (weights cast once here; activations cast in-kernel,
    # which is a no-op on the bf16-activation path).
    mm_dtype = jnp.bfloat16 if use_bf16_matmul else jnp.float32
    w_h_mm = w_h.astype(mm_dtype)
    w_out_mm = w_out.astype(mm_dtype)

    def resident(arr):
        nd = arr.ndim
        return pl.BlockSpec(arr.shape, lambda i, _nd=nd: (0,) * _nd)

    # Advisory cost estimate: EUP (tanh/cos/sin) + ld/st dominate, not MXU.
    flops = int(b_pad) * (
        2 * HIDDEN * IN_FEATS
        + NUM_HIDDEN_LAYERS * (2 * HIDDEN * HIDDEN + 2 * HIDDEN)
        + 2 * HIDDEN * OUT_FEATS + OUT_FEATS)
    transcendentals = int(b_pad) * ((NUM_HIDDEN_LAYERS + 1) * HIDDEN + 2 * IN_DIM)
    param_bytes = sum(int(p.size) * p.dtype.itemsize for p in
                      (w_cos, w_sin, w_t, b_in, w_h_mm, b_h, w_out_mm, b_out))
    bytes_accessed = int(b_pad) * 4 * (1 + IN_DIM + OUT_FEATS) + param_bytes

    kernel = functools.partial(pinn2d_kernel, act_dtype=act_dtype)

    out_fm = pl.pallas_call(
        kernel,
        out_shape=jax.ShapeDtypeStruct((OUT_FEATS, b_pad), jnp.float32),
        grid=(b_pad // tb,),
        in_specs=[
            pl.BlockSpec((IN_DIM, tb), lambda i: (0, i)),    # s (feature-major)
            pl.BlockSpec((1, tb), lambda i: (0, i)),         # t (feature-major)
            resident(w_cos), resident(w_sin), resident(w_t), resident(b_in),
            resident(w_h_mm), resident(b_h),
            resident(w_out_mm), resident(b_out),
        ],
        out_specs=pl.BlockSpec((OUT_FEATS, tb), lambda i: (0, i)),
        compiler_params=pltpu.CompilerParams(
            dimension_semantics=("parallel",)),
        cost_estimate=pl.CostEstimate(
            flops=flops, transcendentals=transcendentals,
            bytes_accessed=bytes_accessed),
    )(s_fm, t_fm, w_cos, w_sin, w_t, b_in, w_h_mm, b_h, w_out_mm, b_out)

    return out_fm[:, :batch].T                       # back to (B, 2)


def init_params(key):
    """Deterministic init mirroring the PyTorch module's shapes/init.

    Weights are PyTorch-native (out_features, in_features); biases are kept
    as (out_features, 1) columns for the feature-major kernel.
    Hidden layers: xavier_normal_ weights, zero biases (as in __init__).
    Input/output layers: PyTorch-default-style uniform init.
    """
    k = jax.random.split(key, 6)

    # input layer Linear(5, 64): uniform(-1/sqrt(in), 1/sqrt(in))
    lim_in = 1.0 / jnp.sqrt(jnp.float32(IN_FEATS))
    w_in = jax.random.uniform(k[0], (HIDDEN, IN_FEATS), jnp.float32, -lim_in, lim_in)
    b_in = jax.random.uniform(k[1], (HIDDEN, 1), jnp.float32, -lim_in, lim_in)
    w_cos = w_in[:, 0:IN_DIM]                        # (64, 2)
    w_sin = w_in[:, IN_DIM:2 * IN_DIM]               # (64, 2)
    w_t = w_in[:, 2 * IN_DIM:]                       # (64, 1)

    # hidden layers Linear(64, 64): xavier normal, zero bias
    xavier_std = jnp.sqrt(2.0 / (HIDDEN + HIDDEN))
    w_h = xavier_std * jax.random.normal(
        k[2], (NUM_HIDDEN_LAYERS, HIDDEN, HIDDEN), jnp.float32)
    b_h = jnp.zeros((NUM_HIDDEN_LAYERS, HIDDEN, 1), jnp.float32)

    # output layer Linear(64, 2)
    lim_out = 1.0 / jnp.sqrt(jnp.float32(HIDDEN))
    w_out = jax.random.uniform(k[3], (OUT_FEATS, HIDDEN), jnp.float32, -lim_out, lim_out)
    b_out = jax.random.uniform(k[4], (OUT_FEATS, 1), jnp.float32, -lim_out, lim_out)

    return (w_cos, w_sin, w_t, b_in, w_h, b_h, w_out, b_out)


def pinn2d_reference(t, samples_prior, params):
    """Pure-JAX (batch-major, f32) mirror of the PyTorch forward pass."""
    (w_cos, w_sin, w_t, b_in, w_h, b_h, w_out, b_out) = params
    w_in = jnp.concatenate([w_cos, w_sin, w_t], axis=1)              # (64, 5)
    inputs = jnp.concatenate(
        [jnp.cos(samples_prior), jnp.sin(samples_prior), t], axis=1)  # (B, 5)
    x = jnp.tanh(inputs @ w_in.T + b_in[:, 0])
    for i in range(NUM_HIDDEN_LAYERS):
        x = jnp.tanh(x @ w_h[i].T + b_h[i, :, 0]) + x
    return x @ w_out.T + b_out[:, 0]


if __name__ == "__main__":
    key = jax.random.PRNGKey(0)
    k_param, k_t, k_s = jax.random.split(key, 3)

    batch = 8
    params = init_params(k_param)
    t = jax.random.uniform(k_t, (batch, 1), jnp.float32)
    samples_prior = jax.random.normal(
        k_s, (batch, N_PARTICLE * N_DIMENSION), jnp.float32)

    ref = pinn2d_reference(t, samples_prior, params)

    # Exact-semantics path (f32 matmuls + f32 activations): tight tolerance.
    out_f32 = jax.block_until_ready(
        pinn2d_forward(t, samples_prior, params,
                       use_bf16_matmul=False, use_bf16_act=False))
    assert out_f32.shape == (batch, OUT_FEATS)
    assert jnp.allclose(out_f32, ref, atol=1e-5, rtol=1e-5), "f32 mismatch vs reference"

    # Default perf path (bf16 MXU operands everywhere; bf16 tanh/residual on
    # v6e/v7x, f32 elementwise on v5e).  Loose tolerance: bf16 rounding
    # accumulates through 4 residual layers on the bf16-activation path.
    out_perf = jax.block_until_ready(pinn2d_forward(t, samples_prior, params))
    assert out_perf.shape == (batch, OUT_FEATS)
    assert jnp.allclose(out_perf, ref, atol=1e-1, rtol=1e-1), "perf-path mismatch vs reference"

    print("KERNEL_OK")
</pallas_src>

<mosaic_0001>
module attributes {stable_mosaic.version = 11 : i64} {
  func.func @pinn2d_kernel(%arg0: i32, %arg1: memref<2x128xf32, #tpu.memory_space<vmem>>, %arg2: memref<1x128xf32, #tpu.memory_space<vmem>>, %arg3: memref<64x2xf32, #tpu.memory_space<vmem>>, %arg4: memref<64x2xf32, #tpu.memory_space<vmem>>, %arg5: memref<64x1xf32, #tpu.memory_space<vmem>>, %arg6: memref<64x1xf32, #tpu.memory_space<vmem>>, %arg7: memref<4x64x64xf32, #tpu.memory_space<vmem>>, %arg8: memref<4x64x1xf32, #tpu.memory_space<vmem>>, %arg9: memref<2x64xf32, #tpu.memory_space<vmem>>, %arg10: memref<2x1xf32, #tpu.memory_space<vmem>>, %arg11: memref<2x128xf32, #tpu.memory_space<vmem>>) attributes {dimension_semantics = [#tpu.dimension_semantics<parallel>], iteration_bounds = array<i64: 1>, scalar_prefetch = 0 : i64, scratch_operands = 0 : i64, tpu.core_type = #tpu.core_type<tc>, window_params = [{transform_indices = @transform_0, window_bounds = array<i64: 2, 128>}, {transform_indices = @transform_1, window_bounds = array<i64: 1, 128>}, {pipeline_mode = #tpu.pipeline_mode<synchronous>, transform_indices = @transform_2, window_bounds = array<i64: 64, 2>}, {pipeline_mode = #tpu.pipeline_mode<synchronous>, transform_indices = @transform_3, window_bounds = array<i64: 64, 2>}, {pipeline_mode = #tpu.pipeline_mode<synchronous>, transform_indices = @transform_4, window_bounds = array<i64: 64, 1>}, {pipeline_mode = #tpu.pipeline_mode<synchronous>, transform_indices = @transform_5, window_bounds = array<i64: 64, 1>}, {pipeline_mode = #tpu.pipeline_mode<synchronous>, transform_indices = @transform_6, window_bounds = array<i64: 4, 64, 64>}, {pipeline_mode = #tpu.pipeline_mode<synchronous>, transform_indices = @transform_7, window_bounds = array<i64: 4, 64, 1>}, {pipeline_mode = #tpu.pipeline_mode<synchronous>, transform_indices = @transform_8, window_bounds = array<i64: 2, 64>}, {pipeline_mode = #tpu.pipeline_mode<synchronous>, transform_indices = @transform_9, window_bounds = array<i64: 2, 1>}, {transform_indices = @transform_10, window_bounds = array<i64: 2, 128>}]} {
    %c0 = arith.constant 0 : index
    %c0_0 = arith.constant 0 : index
    %0 = vector.load %arg1[%c0, %c0_0] : memref<2x128xf32, #tpu.memory_space<vmem>>, vector<2x128xf32>
    %c0_1 = arith.constant 0 : index
    %c0_2 = arith.constant 0 : index
    %1 = vector.load %arg2[%c0_1, %c0_2] : memref<1x128xf32, #tpu.memory_space<vmem>>, vector<1x128xf32>
    %2 = math.cos %0 : vector<2x128xf32>
    %3 = math.sin %0 : vector<2x128xf32>
    %c0_3 = arith.constant 0 : index
    %c0_4 = arith.constant 0 : index
    %4 = vector.load %arg3[%c0_3, %c0_4] : memref<64x2xf32, #tpu.memory_space<vmem>>, vector<64x2xf32>
    %c0_5 = arith.constant 0 : index
    %c0_6 = arith.constant 0 : index
    %5 = vector.load %arg4[%c0_5, %c0_6] : memref<64x2xf32, #tpu.memory_space<vmem>>, vector<64x2xf32>
    %c0_7 = arith.constant 0 : index
    %c0_8 = arith.constant 0 : index
    %6 = vector.load %arg6[%c0_7, %c0_8] : memref<64x1xf32, #tpu.memory_space<vmem>>, vector<64x1xf32>
    %c0_9 = arith.constant 0 : index
    %c0_10 = arith.constant 0 : index
    %7 = vector.load %arg5[%c0_9, %c0_10] : memref<64x1xf32, #tpu.memory_space<vmem>>, vector<64x1xf32>
    %8 = vector.broadcast %7 : vector<64x1xf32> to vector<64x128xf32>
    %9 = vector.broadcast %1 : vector<1x128xf32> to vector<64x128xf32>
    %10 = arith.mulf %8, %9 : vector<64x128xf32>
    %11 = vector.broadcast %6 : vector<64x1xf32> to vector<64x128xf32>
    %12 = arith.addf %11, %10 : vector<64x128xf32>
    %13 = vector.extract_strided_slice %4 {offsets = [0, 0], sizes = [64, 1], strides = [1, 1]} : vector<64x2xf32> to vector<64x1xf32>
    %14 = vector.extract_strided_slice %2 {offsets = [0, 0], sizes = [1, 128], strides = [1, 1]} : vector<2x128xf32> to vector<1x128xf32>
    %15 = vector.broadcast %13 : vector<64x1xf32> to vector<64x128xf32>
    %16 = vector.broadcast %14 : vector<1x128xf32> to vector<64x128xf32>
    %17 = arith.mulf %15, %16 : vector<64x128xf32>
    %18 = arith.addf %12, %17 : vector<64x128xf32>
    %19 = vector.extract_strided_slice %5 {offsets = [0, 0], sizes = [64, 1], strides = [1, 1]} : vector<64x2xf32> to vector<64x1xf32>
    %20 = vector.extract_strided_slice %3 {offsets = [0, 0], sizes = [1, 128], strides = [1, 1]} : vector<2x128xf32> to vector<1x128xf32>
    %21 = vector.broadcast %19 : vector<64x1xf32> to vector<64x128xf32>
    %22 = vector.broadcast %20 : vector<1x128xf32> to vector<64x128xf32>
    %23 = arith.mulf %21, %22 : vector<64x128xf32>
    %24 = arith.addf %18, %23 : vector<64x128xf32>
    %25 = vector.extract_strided_slice %4 {offsets = [0, 1], sizes = [64, 1], strides = [1, 1]} : vector<64x2xf32> to vector<64x1xf32>
    %26 = vector.extract_strided_slice %2 {offsets = [1, 0], sizes = [1, 128], strides = [1, 1]} : vector<2x128xf32> to vector<1x128xf32>
    %27 = vector.broadcast %25 : vector<64x1xf32> to vector<64x128xf32>
    %28 = vector.broadcast %26 : vector<1x128xf32> to vector<64x128xf32>
    %29 = arith.mulf %27, %28 : vector<64x128xf32>
    %30 = arith.addf %24, %29 : vector<64x128xf32>
    %31 = vector.extract_strided_slice %5 {offsets = [0, 1], sizes = [64, 1], strides = [1, 1]} : vector<64x2xf32> to vector<64x1xf32>
    %32 = vector.extract_strided_slice %3 {offsets = [1, 0], sizes = [1, 128], strides = [1, 1]} : vector<2x128xf32> to vector<1x128xf32>
    %33 = vector.broadcast %31 : vector<64x1xf32> to vector<64x128xf32>
    %34 = vector.broadcast %32 : vector<1x128xf32> to vector<64x128xf32>
    %35 = arith.mulf %33, %34 : vector<64x128xf32>
    %36 = arith.addf %30, %35 : vector<64x128xf32>
    %37 = math.tanh %36 : vector<64x128xf32>
    %c0_11 = arith.constant 0 : index
    %c0_12 = arith.constant 0 : index
    %c0_13 = arith.constant 0 : index
    %38 = vector.load %arg7[%c0_11, %c0_12, %c0_13] : memref<4x64x64xf32, #tpu.memory_space<vmem>>, vector<1x64x64xf32>
    %39 = vector.shape_cast %38 : vector<1x64x64xf32> to vector<64x64xf32>
    %cst = arith.constant dense<0.000000e+00> : vector<64x128xf32>
    %40 = tpu.matmul %39, %37, %cst {dimension_numbers = #tpu.dot_dimension_numbers<[1], [0], [0], [1], [0, 0, 1, 1], [], []>} : vector<64x64xf32>, vector<64x128xf32>, vector<64x128xf32> -> vector<64x128xf32>
    %c0_14 = arith.constant 0 : index
    %c0_15 = arith.constant 0 : index
    %c0_16 = arith.constant 0 : index
    %41 = vector.load %arg8[%c0_14, %c0_15, %c0_16] : memref<4x64x1xf32, #tpu.memory_space<vmem>>, vector<1x64x1xf32>
    %42 = vector.shape_cast %41 : vector<1x64x1xf32> to vector<64x1xf32>
    %43 = vector.broadcast %42 : vector<64x1xf32> to vector<64x128xf32>
    %44 = arith.addf %40, %43 : vector<64x128xf32>
    %45 = math.tanh %44 : vector<64x128xf32>
    %46 = arith.addf %45, %37 : vector<64x128xf32>
    %c1 = arith.constant 1 : index
    %c0_17 = arith.constant 0 : index
    %c0_18 = arith.constant 0 : index
    %47 = vector.load %arg7[%c1, %c0_17, %c0_18] : memref<4x64x64xf32, #tpu.memory_space<vmem>>, vector<1x64x64xf32>
    %48 = vector.shape_cast %47 : vector<1x64x64xf32> to vector<64x64xf32>
    %cst_19 = arith.constant dense<0.000000e+00> : vector<64x128xf32>
    %49 = tpu.matmul %48, %46, %cst_19 {dimension_numbers = #tpu.dot_dimension_numbers<[1], [0], [0], [1], [0, 0, 1, 1], [], []>} : vector<64x64xf32>, vector<64x128xf32>, vector<64x128xf32> -> vector<64x128xf32>
    %c1_20 = arith.constant 1 : index
    %c0_21 = arith.constant 0 : index
    %c0_22 = arith.constant 0 : index
    %50 = vector.load %arg8[%c1_20, %c0_21, %c0_22] : memref<4x64x1xf32, #tpu.memory_space<vmem>>, vector<1x64x1xf32>
    %51 = vector.shape_cast %50 : vector<1x64x1xf32> to vector<64x1xf32>
    %52 = vector.broadcast %51 : vector<64x1xf32> to vector<64x128xf32>
    %53 = arith.addf %49, %52 : vector<64x128xf32>
    %54 = math.tanh %53 : vector<64x128xf32>
    %55 = arith.addf %54, %46 : vector<64x128xf32>
    %c2 = arith.constant 2 : index
    %c0_23 = arith.constant 0 : index
    %c0_24 = arith.constant 0 : index
    %56 = vector.load %arg7[%c2, %c0_23, %c0_24] : memref<4x64x64xf32, #tpu.memory_space<vmem>>, vector<1x64x64xf32>
    %57 = vector.shape_cast %56 : vector<1x64x64xf32> to vector<64x64xf32>
    %cst_25 = arith.constant dense<0.000000e+00> : vector<64x128xf32>
    %58 = tpu.matmul %57, %55, %cst_25 {dimension_numbers = #tpu.dot_dimension_numbers<[1], [0], [0], [1], [0, 0, 1, 1], [], []>} : vector<64x64xf32>, vector<64x128xf32>, vector<64x128xf32> -> vector<64x128xf32>
    %c2_26 = arith.constant 2 : index
    %c0_27 = arith.constant 0 : index
    %c0_28 = arith.constant 0 : index
    %59 = vector.load %arg8[%c2_26, %c0_27, %c0_28] : memref<4x64x1xf32, #tpu.memory_space<vmem>>, vector<1x64x1xf32>
    %60 = vector.shape_cast %59 : vector<1x64x1xf32> to vector<64x1xf32>
    %61 = vector.broadcast %60 : vector<64x1xf32> to vector<64x128xf32>
    %62 = arith.addf %58, %61 : vector<64x128xf32>
    %63 = math.tanh %62 : vector<64x128xf32>
    %64 = arith.addf %63, %55 : vector<64x128xf32>
    %c3 = arith.constant 3 : index
    %c0_29 = arith.constant 0 : index
    %c0_30 = arith.constant 0 : index
    %65 = vector.load %arg7[%c3, %c0_29, %c0_30] : memref<4x64x64xf32, #tpu.memory_space<vmem>>, vector<1x64x64xf32>
    %66 = vector.shape_cast %65 : vector<1x64x64xf32> to vector<64x64xf32>
    %cst_31 = arith.constant dense<0.000000e+00> : vector<64x128xf32>
    %67 = tpu.matmul %66, %64, %cst_31 {dimension_numbers = #tpu.dot_dimension_numbers<[1], [0], [0], [1], [0, 0, 1, 1], [], []>} : vector<64x64xf32>, vector<64x128xf32>, vector<64x128xf32> -> vector<64x128xf32>
    %c3_32 = arith.constant 3 : index
    %c0_33 = arith.constant 0 : index
    %c0_34 = arith.constant 0 : index
    %68 = vector.load %arg8[%c3_32, %c0_33, %c0_34] : memref<4x64x1xf32, #tpu.memory_space<vmem>>, vector<1x64x1xf32>
    %69 = vector.shape_cast %68 : vector<1x64x1xf32> to vector<64x1xf32>
    %70 = vector.broadcast %69 : vector<64x1xf32> to vector<64x128xf32>
    %71 = arith.addf %67, %70 : vector<64x128xf32>
    %72 = math.tanh %71 : vector<64x128xf32>
    %73 = arith.addf %72, %64 : vector<64x128xf32>
    %c0_35 = arith.constant 0 : index
    %c0_36 = arith.constant 0 : index
    %74 = vector.load %arg9[%c0_35, %c0_36] : memref<2x64xf32, #tpu.memory_space<vmem>>, vector<2x64xf32>
    %cst_37 = arith.constant dense<0.000000e+00> : vector<2x128xf32>
    %75 = tpu.matmul %74, %73, %cst_37 {dimension_numbers = #tpu.dot_dimension_numbers<[1], [0], [0], [1], [0, 0, 1, 1], [], []>} : vector<2x64xf32>, vector<64x128xf32>, vector<2x128xf32> -> vector<2x128xf32>
    %c0_38 = arith.constant 0 : index
    %c0_39 = arith.constant 0 : index
    %76 = vector.load %arg10[%c0_38, %c0_39] : memref<2x1xf32, #tpu.memory_space<vmem>>, vector<2x1xf32>
    %77 = vector.broadcast %76 : vector<2x1xf32> to vector<2x128xf32>
    %78 = arith.addf %75, %77 : vector<2x128xf32>
    %c0_40 = arith.constant 0 : index
    %c0_41 = arith.constant 0 : index
    %79 = vector.load %arg11[%c0_40, %c0_41] : memref<2x128xf32, #tpu.memory_space<vmem>>, vector<2x128xf32>
    tpu.vector_store %arg11[%c0_40, %c0_41], %78 {strides = array<i32>} : memref<2x128xf32, #tpu.memory_space<vmem>>, vector<2x128xf32>,
    return
  }
  func.func @transform_0(%arg0: i32) -> (i32, i32) {
    %c0_i32 = arith.constant 0 : i32
    %c0_i32_0 = arith.constant 0 : i32
    return %c0_i32, %arg0 : i32, i32
  }
  func.func @transform_1(%arg0: i32) -> (i32, i32) {
    %c0_i32 = arith.constant 0 : i32
    %c0_i32_0 = arith.constant 0 : i32
    return %c0_i32, %arg0 : i32, i32
  }
  func.func @transform_2(%arg0: i32) -> (i32, i32) {
    %c0_i32 = arith.constant 0 : i32
    %c0_i32_0 = arith.constant 0 : i32
    %c0_i32_1 = arith.constant 0 : i32
    return %c0_i32, %c0_i32_0 : i32, i32
  }
  func.func @transform_3(%arg0: i32) -> (i32, i32) {
    %c0_i32 = arith.constant 0 : i32
    %c0_i32_0 = arith.constant 0 : i32
    %c0_i32_1 = arith.constant 0 : i32
    return %c0_i32, %c0_i32_0 : i32, i32
  }
  func.func @transform_4(%arg0: i32) -> (i32, i32) {
    %c0_i32 = arith.constant 0 : i32
    %c0_i32_0 = arith.constant 0 : i32
    %c0_i32_1 = arith.constant 0 : i32
    return %c0_i32, %c0_i32_0 : i32, i32
  }
  func.func @transform_5(%arg0: i32) -> (i32, i32) {
    %c0_i32 = arith.constant 0 : i32
    %c0_i32_0 = arith.constant 0 : i32
    %c0_i32_1 = arith.constant 0 : i32
    return %c0_i32, %c0_i32_0 : i32, i32
  }
  func.func @transform_6(%arg0: i32) -> (i32, i32, i32) {
    %c0_i32 = arith.constant 0 : i32
    %c0_i32_0 = arith.constant 0 : i32
    %c0_i32_1 = arith.constant 0 : i32
    %c0_i32_2 = arith.constant 0 : i32
    return %c0_i32, %c0_i32_0, %c0_i32_1 : i32, i32, i32
  }
  func.func @transform_7(%arg0: i32) -> (i32, i32, i32) {
    %c0_i32 = arith.constant 0 : i32
    %c0_i32_0 = arith.constant 0 : i32
    %c0_i32_1 = arith.constant 0 : i32
    %c0_i32_2 = arith.constant 0 : i32
    return %c0_i32, %c0_i32_0, %c0_i32_1 : i32, i32, i32
  }
  func.func @transform_8(%arg0: i32) -> (i32, i32) {
    %c0_i32 = arith.constant 0 : i32
    %c0_i32_0 = arith.constant 0 : i32
    %c0_i32_1 = arith.constant 0 : i32
    return %c0_i32, %c0_i32_0 : i32, i32
  }
  func.func @transform_9(%arg0: i32) -> (i32, i32) {
    %c0_i32 = arith.constant 0 : i32
    %c0_i32_0 = arith.constant 0 : i32
    %c0_i32_1 = arith.constant 0 : i32
    return %c0_i32, %c0_i32_0 : i32, i32
  }
  func.func @transform_10(%arg0: i32) -> (i32, i32) {
    %c0_i32 = arith.constant 0 : i32
    %c0_i32_0 = arith.constant 0 : i32
    return %c0_i32, %arg0 : i32, i32
  }
}

</mosaic_0001>

<bundles_post_ra>
// kernel: tpu_custom_call.1
= control target key start
LH: loop header
LB: loop body
LE: loop exit
PB: predicated region body
PF: predicated region fallthrough
CT: control target
= control target key end

     0   :  { %v2027_v2 = vmov 0   ;;  %s2808_s0 = inlined_call_operand.vmem [shape: f32[2,128], index: 0, kind: input, shape index: {}]   ;;  %s2809_s1 = inlined_call_operand.vmem [shape: f32[1,128], index: 1, kind: input, shape index: {}]   ;;  %s2810_s2 = inlined_call_operand.vmem [shape: f32[64,2], index: 2, kind: input, shape index: {}]   ;;  %s2811_s3 = inlined_call_operand.vmem [shape: f32[64,2], index: 3, kind: input, shape index: {}]   ;;  %s2812_s4 = inlined_call_operand.vmem [shape: f32[64,1], index: 4, kind: input, shape index: {}]   ;;  %s2813_s5 = inlined_call_operand.vmem [shape: f32[64,1], index: 5, kind: input, shape index: {}]   ;;  %s2814_s6 = inlined_call_operand.vmem [shape: f32[4,64,64], index: 6, kind: input, shape index: {}]   ;;  %s2815_s7 = inlined_call_operand.vmem [shape: f32[4,64,1], index: 7, kind: input, shape index: {}]   ;;  %s2816_s8 = inlined_call_operand.vmem [shape: f32[2,64], index: 8, kind: input, shape index: {}]   ;;  %s2817_s9 = inlined_call_operand.vmem [shape: f32[2,1], index: 9, kind: input, shape index: {}]   ;;  %s2818_s10 = inlined_call_operand.hbm [shape: f32[2,128], index: 10, kind: output, shape index: {}]  }
   0x1   :  { %v269_v0 = vld [vmem:[%s2812_s4] sm:$0xff]  ;;  %1904 = vset.pattern.permute.xlu1 %v2027_v2  ;;  %1903 = vset.pattern.permute.xlu0 %v2027_v2  ;;  %v270_v3 = vld [vmem:[%s2812_s4 + $0x8] sm:$0xff]  ;;  %v272_v7 = vld [vmem:[%s2812_s4 + $0x18] sm:$0xff] }
   0x2   :  { %v261_v1 = vld [vmem:[%s2813_s5] sm:$0xff]  ;;  %279 = vperm.xlu0 %1903, %v269_v0   ;;  %v262_v4 = vld [vmem:[%s2813_s5 + $0x8] sm:$0xff]  ;;  %v271_v8 = vld [vmem:[%s2812_s4 + $0x10] sm:$0xff] }
   0x3   :  { %333 = vperm.xlu1 %1904, %v261_v1   ;;  %v246_v5 = vld [vmem:[%s2810_s2 + $0x8] sm:$0xff]  ;;  %v2114_v6 = vld [vmem:[%s2810_s2] sm:$0xff] }
   0x4   :  { %v2126_v9 = vld [vmem:[%s2808_s0] sm:$0x3] }
   0x6   :  { %284 = vperm.xlu0 %1903, %v270_v3  }
   0x7   :  { %338 = vperm.xlu1 %1904, %v262_v4  }
   0xa   :  { %381 = vperm.xlu0 %1903, %v2114_v6  }
   0xb   :  { %386 = vperm.xlu1 %1904, %v246_v5  }
   0xc   :  { %15 = vsyncpa [#allocation3], 0  ;;  %v41_v10 = vand.u32 2139095040, %v2126_v9  ;;  %v2132_v12 = vld [vmem:[%s2811_s3 + $0x8] sm:$0xff]  ;;  %v2137_v13 = vld [vmem:[%s2811_s3] sm:$0xff]  ;;  %v2028_v24 = vmov 1  }
   0xd   :  { %v264_v16 = vld [vmem:[%s2813_s5 + $0x18] sm:$0xff]  ;;  %v263_v17 = vld [vmem:[%s2813_s5 + $0x10] sm:$0xff]  ;;  %v274_v22 = vld [vmem:[%s2812_s4 + $0x28] sm:$0xff]  ;;  %v2029_v27 = vmov 2102212464   ;;  %vm40_vm7 = vcmp.lt.s32.totalorder %v2126_v9, 0 }
   0xe   :  { %289 = vperm.xlu0 %1903, %v271_v8   ;;  %v42_v11 = vshrl.u32 %v41_v10, 23  ;;  %v2150_v19 = vld [vmem:[%s2810_s2 + $0x18] sm:$0xff]  ;;  %v2155_v20 = vld [vmem:[%s2810_s2 + $0x10] sm:$0xff]  ;;  %v266_v25 = vld [vmem:[%s2813_s5 + $0x28] sm:$0xff]  ;;  %v2030_v29 = vmov 920167782  }
   0xf   :  { %294 = vperm.xlu1 %1904, %v272_v7   ;;  %v273_v26 = vld [vmem:[%s2812_s4 + $0x20] sm:$0xff]  ;;  %v38_v31 = vand.u32 2147483647, %v2126_v9  ;;  %v2031_v34 = vmov 1326507024   ;;  %v276_v36 = vld [vmem:[%s2812_s4 + $0x38] sm:$0xff] }
  0x10   :  { %v1517_v14 = vadd.s32 4294967169, %v42_v11  ;;  %v2032_v37 = vmov 683565275   ;;  %v2033_v39 = vmov 2475754826   ;;  %v255_v46 = vld [vmem:[%s2811_s3 + $0x10] sm:$0xff] }
  0x11   :  { %v2034_v42 = vmov 2131351028   ;;  %v45_v48 = vand.u32 8388607, %v38_v31  ;;  %v268_v50 = vld [vmem:[%s2813_s5 + $0x38] sm:$0xff]  ;;  %vm667_vm9 = vcmask 523264  }
  0x12   :  { %441 = vperm.xlu0 %1903, %v2137_v13   ;;  %v48_v15 = vadd.s32 1, %v1517_v14  ;;  %v2195_v54 = vld [vmem:[%s2811_s3 + $0x18] sm:$0xff]  ;;  %vm2304_vm8 = vcmp.le.f32.partialorder %v38_v31, 0.7853982  ;;  %s2038_s13 = smov [#allocation2]  }
  0x13   :  { %446 = vperm.xlu1 %1904, %v2132_v12   ;;  %v46_v56 = vor.u32 8388608, %v45_v48  ;;  %v260_v58 = vld [vmem:[%s2811_s3 + $0x38] sm:$0xff]  ;;  %s1509_s14 = sshll.u32 %s2038_s13, 4  ;;  %s1510_s14 = int_to_ptr.vmem [resolvable:$true] %s1509_s14 }
  0x14   :  { %vm49_vm0 = vcmp.gt.s32.totalorder %v48_v15, 0  ;;  %s2003_s0 = scalar_lea.vmem %s1510_s14, 32  ;;  %p2008_p1 = scmp.lt.s32.totalorder %s1510_s14, %s1510_s14 }
  0x15   :  { %v50_v18 = vsel %vm49_vm0, %v48_v15, 0  ;;  %v86_v63 = vshll.u32 %v46_v56, 8  ;;  %vm130_vm0 = vweird.f32 %v2126_v9  ;;  %p2004_p0 = scmp.ne.s32.totalorder %s1510_s14, %s2003_s0  ;;  %p2009_p2 = scmp.lt.s32.totalorder %s2003_s0, %s2003_s0 }
  0x16   :  { %343 = vperm.xlu0 %1903, %v263_v17   ;;  %v52_v21 = vand.u32 31, %v50_v18  ;;  %v2173_v32 = vshrl.u32 %v50_v18, 5 }
  0x17   :  { %348 = vperm.xlu1 %1904, %v264_v16   ;;  %p2010_p3 = por %p2009_p2, %p2008_p1 }
  0x18   :  { %v2162_v23 = vsub.s32 32, %v52_v21  ;;  %v64_v28 = vshll.u32 %v2029_v27, %v52_v21  ;;  %v67_v33 = vshll.u32 %v2030_v29, %v52_v21  ;;  %v55_v38 = vshll.u32 %v2032_v37, %v52_v21 }
  0x19   :  { %v58_v40 = vshll.u32 %v2033_v39, %v52_v21  ;;  %v61_v44 = vshll.u32 %v2034_v42, %v52_v21  ;;  %vm73_vm1 = vcmp.lt.s32.totalorder %v2173_v32, 4  ;;  %vm70_vm2 = vcmp.lt.s32.totalorder %v2173_v32, 1  ;;  %p2011_p4 = pnand %p2010_p3, %p2004_p0 }
  0x1a   :  { %391 = vperm.xlu0 %1903, %v2155_v20   ;;  %v65_v30 = vshrl.u32 %v2030_v29, %v2162_v23  ;;  %v68_v35 = vshrl.u32 %v2031_v34, %v2162_v23  ;;  %v56_v41 = vshrl.u32 %v2033_v39, %v2162_v23  ;;  %v59_v43 = vshrl.u32 %v2034_v42, %v2162_v23  ;;  %v252_v34 = vld [vmem:[%s2810_s2 + $0x38] sm:$0xff] }
  0x1b   :  { %396 = vperm.xlu1 %1904, %v2150_v19   ;;  %v62_v45 = vshrl.u32 %v2029_v27, %v2162_v23  ;;  %vm72_vm3 = vcmp.lt.s32.totalorder %v2173_v32, 3  ;;  %vm71_vm4 = vcmp.lt.s32.totalorder %v2173_v32, 2  ;;  %v54_v7 = vshrl.u32 %v2032_v37, %v2162_v23  ;;  %v251_v23 = vld [vmem:[%s2810_s2 + $0x30] sm:$0xff] }
  0x1c   :  { %v66_v47 = vor.u32 %v65_v30, %v64_v28  ;;  %v69_v49 = vor.u32 %v68_v35, %v67_v33  ;;  %v57_v51 = vor.u32 %v56_v41, %v55_v38  ;;  %v60_v52 = vor.u32 %v59_v43, %v58_v40  ;;  %v267_v30 = vld [vmem:[%s2813_s5 + $0x30] sm:$0xff] }
  0x1d   :  { %v63_v53 = vor.u32 %v62_v45, %v61_v44  ;;  %v259_v37 = vld [vmem:[%s2811_s3 + $0x30] sm:$0xff] }
  0x1e   :  { %304 = vperm.xlu0 %1903, %v274_v22   ;;  %v79_v55 = vsel %vm73_vm1, %v66_v47, 920167782  ;;  %v83_v57 = vsel %vm73_vm1, %v69_v49, 1326507024  ;;  %v78_v59 = vsel %vm70_vm2, %v57_v51, %v60_v52 }
  0x1f   :  { %1905 = vset.pattern.permute.xlu1 %v2028_v24  ;;  %v80_v60 = vsel %vm72_vm3, %v63_v53, %v79_v55  ;;  %v82_v61 = vsel %vm70_vm2, %v60_v52, %v63_v53  ;;  %v84_v62 = vsel %vm72_vm3, %v66_v47, %v83_v57  ;;  %v75_v11 = vsel %vm73_vm1, %v63_v53, 2102212464 }
  0x20   :  { %504 = vperm.xlu1 %1905, %v246_v5   ;;  %v81_v0 = vsel %vm71_vm4, %v78_v59, %v80_v60  ;;  %v85_v1 = vsel %vm71_vm4, %v82_v61, %v84_v62  ;;  %v265_v5 = vld [vmem:[%s2813_s5 + $0x20] sm:$0xff]  ;;  %v76_v14 = vsel %vm72_vm3, %v60_v52, %v75_v11  ;;  %vm2036_vm1 = vmmov 0  }
  0x21   :  { %v2223_v3 = vmul.u32.u64.low %v86_v63, %v81_v0  ;;  %v2224_v4 = vmul.u32.u64.high %v86_v63, %v81_v0, %v2223_v3  ;;  %v2232_v8 = vmul.u32.u64.low %v86_v63, %v85_v1  ;;  %v2233_v10 = vmul.u32.u64.high %v86_v63, %v85_v1, %v2232_v8  ;;  %v611_v60 = vld [vmem:[%s2814_s6] sm:$0xff] }
  0x22   :  { %358 = vperm.xlu0 %1903, %v266_v25   ;;  %v257_v25 = vld [vmem:[%s2811_s3 + $0x20] sm:$0xff]  ;;  %1696 = vmatprep.mubr.msk.f32.mxu0 %vm667_vm9, %v611_v60  ;;  %v1544_v60 = vld [vmem:[%s2815_s7 + $0x50] sm:$0xff] }
  0x23   :  { %v96_v16 = vadd.s32 1, %v2224_v4  ;;  %vm95_vm5 = vc.u32 %v2233_v10, %v2223_v3  ;;  %v94_v39 = vadd.s32 %v2223_v3, %v2233_v10 }
  0x24   :  { %1906 = vset.pattern.permute.xlu1 %v2027_v2 }
  0x25   :  { %299 = vperm.xlu1 %1906, %v273_v26   ;;  %v97_v18 = vsel %vm95_vm5, %v96_v16, %v2224_v4  ;;  %v2346_v16 = vld [vmem:[%s2809_s1] ss:$0 sm:$0xff] }
  0x26   :  { %314 = vperm.xlu0 %1903, %v276_v36  }
  0x29   :  { %451 = vperm.xlu1 %1906, %v255_v46  }
  0x2a   :  { %368 = vperm.xlu0 %1903, %v268_v50  }
  0x2d   :  { %456 = vperm.xlu1 %1906, %v2195_v54  }
  0x2e   :  { %476 = vperm.xlu0 %1903, %v260_v58  }
  0x31   :  { %1907 = vset.pattern.permute.xlu1 %v2028_v24 }
  0x32   :  { %556 = vperm.xlu1 %1907, %v2132_v12   ;;  %1915 = vset.pattern.permute.xlu0 %v2028_v24  ;;  %v74_v12 = vsel %vm70_vm2, %v54_v7, %v57_v51 }
  0x33   :  { %500 = vperm.xlu0 %1915, %v2114_v6   ;;  %v249_v6 = vld [vmem:[%s2810_s2 + $0x20] sm:$0xff]  ;;  %v77_v15 = vsel %vm71_vm4, %v74_v12, %v76_v14 }
  0x34   :  { %v93_v17 = vmul.u32 %v86_v63, %v77_v15  ;;  %v419_v15 = vlaneseq }
  0x36   :  { %1908 = vset.pattern.permute.xlu1 %v2027_v2  ;;  %v98_v21 = vadd.s32 %v97_v18, %v93_v17 }
  0x37   :  { %353 = vperm.xlu1 %1908, %v265_v5   ;;  %552 = vperm.xlu0 %1915, %v2137_v13   ;;  %v250_v13 = vld [vmem:[%s2810_s2 + $0x28] sm:$0xff] }
  0x38   :  { %v99_v22 = vadd.s32 536870912, %v98_v21 }
  0x3a   :  { %v2268_v26 = vshrl.u32 %v99_v22, 30 }
  0x3b   :  { %401 = vperm.xlu1 %1908, %v249_v6   ;;  %508 = vperm.xlu0 %1915, %v2155_v20   ;;  %v275_v20 = vld [vmem:[%s2812_s4 + $0x30] sm:$0xff] }
  0x3c   :  { %v101_v27 = vshll.u32 %v2268_v26, 30  ;;  %v124_v31 = vsub.s32 4, %v2268_v26 }
  0x3e   :  { %v102_v28 = vsub.s32 %v98_v21, %v101_v27  ;;  %v125_v63 = vsel %vm40_vm7, %v124_v31, %v2268_v26  ;;  %v619_v21 = vld [vmem:[%s2815_s7] sm:$0xff]  ;;  %v621_v26 = vld [vmem:[%s2815_s7 + $0x10] sm:$0xff] }
  0x3f   :  { %406 = vperm.xlu1 %1908, %v250_v13   ;;  %560 = vperm.xlu0 %1915, %v255_v46   ;;  %v127_v0 = vsel %vm2304_vm8, 0, %v125_v63 }
  0x40   :  { %v104_v29 = vsub.s32 0, %v102_v28  ;;  %v234_v4 = vadd.s32 3, %v127_v0  ;;  %v131_v8 = vand.u32 3, %v127_v0 }
  0x42   :  { %v1518_v32 = vmin.u32 %v104_v29, %v102_v28  ;;  %vm133_vm10 = vcmp.eq.s32.totalorder %v131_v8, 0  ;;  %vm136_vm11 = vcmp.eq.s32.totalorder %v131_v8, 2  ;;  %vm132_vm14 = vcmp.lt.s32.totalorder %v131_v8, 2  ;;  %v623_v29 = vld [vmem:[%s2815_s7 + $0x20] sm:$0xff]  ;;  %v1543_v8 = vld [vmem:[%s2815_s7 + $0x48] sm:$0xff] }
  0x43   :  { %1909 = vset.pattern.permute.xlu1 %v2028_v24  ;;  %516 = vperm.xlu0 %1915, %v249_v6   ;;  %v235_v6 = vand.u32 3, %v234_v4 }
  0x44   :  { %512 = vperm.xlu1 %1909, %v2150_v19   ;;  %v258_v19 = vld [vmem:[%s2811_s3 + $0x28] sm:$0xff]  ;;  %v106_v33 = vclz %v1518_v32 }
  0x45   :  { %vm237_vm12 = vcmp.eq.s32.totalorder %v235_v6, 0  ;;  %vm240_vm13 = vcmp.eq.s32.totalorder %v235_v6, 2  ;;  %vm236_vm15 = vcmp.lt.s32.totalorder %v235_v6, 2  ;;  %v1546_v6 = vld [vmem:[%s2815_s7 + $0x60] sm:$0xff] }
  0x46   :  { %v1519_v35 = vadd.s32 4294967294, %v106_v33 }
  0x47   :  { %524 = vperm.xlu0 %1915, %v251_v23  }
  0x48   :  { %1910 = vset.pattern.permute.xlu1 %v2027_v2  ;;  %vm1520_vm6 = vcmp.lt.s32.totalorder %v1519_v35, 0 }
  0x49   :  { %309 = vperm.xlu1 %1910, %v275_v20   ;;  %v109_v36 = vsel %vm1520_vm6, 0, %v1519_v35 }
  0x4a   :  { %v114_v38 = vsub.s32 4294967266, %v109_v36  ;;  %v110_v40 = vsub.s32 32, %v109_v36  ;;  %v111_v42 = vshll.u32 %v102_v28, %v109_v36  ;;  %v622_v36 = vld [vmem:[%s2815_s7 + $0x18] sm:$0xff] }
  0x4b   :  { %580 = vperm.xlu0 %1915, %v260_v58  }
  0x4c   :  { %v115_v41 = vadd.s32 127, %v114_v38  ;;  %v112_v43 = vshrl.u32 %v94_v39, %v110_v40  ;;  %v625_v39 = vld [vmem:[%s2815_s7 + $0x30] sm:$0xff] }
  0x4d   :  { %461 = vperm.xlu1 %1910, %v257_v25  }
  0x4e   :  { %v116_v44 = vshll.u32 %v115_v41, 23  ;;  %v113_v45 = vor.u32 %v112_v43, %v111_v42 }
  0x4f   :  { %1918 = vset.pattern.permute.xlu0 %v2027_v2 }
  0x50   :  { %v117_v46 = vor.u32 4788187, %v116_v44  ;;  %v120_v48 = vcvt.s32.f32 %v113_v45  ;;  %v624_v44 = vld [vmem:[%s2815_s7 + $0x28] sm:$0xff] }
  0x51   :  { %466 = vperm.xlu1 %1910, %v258_v19  }
  0x52   :  { %v118_v47 = vand.u32 2147483647, %v117_v46  ;;  %v1542_v46 = vld [vmem:[%s2815_s7 + $0x40] sm:$0xff] }
  0x54   :  { %v121_v49 = vmul.f32 %v120_v48, %v118_v47 }
  0x55   :  { %1911 = vset.pattern.permute.xlu1 %v2028_v24 }
  0x56   :  { %564 = vperm.xlu1 %1911, %v2195_v54   ;;  %v122_v52 = vxor.u32 2147483648, %v121_v49 }
  0x58   :  { %v123_v55 = vsel %vm40_vm7, %v122_v52, %v121_v49 }
  0x5a   :  { %1912 = vset.pattern.permute.xlu1 %v2027_v2 }
  0x5b   :  { %363 = vperm.xlu1 %1912, %v267_v30  }
  0x5f   :  { %411 = vperm.xlu1 %1912, %v251_v23   ;;  %v620_v23 = vld [vmem:[%s2815_s7 + $0x8] sm:$0xff] }
  0x60   :  { %634 = vperm.xlu0 %1918, %v620_v23  }
  0x63   :  { %416 = vperm.xlu1 %1912, %v252_v34  }
  0x64   :  { %649 = vperm.xlu0 %1918, %v623_v29   ;;  %v1549_v29 = vld [vmem:[%s2815_s7 + $0x78] sm:$0xff] }
  0x67   :  { %1913 = vset.pattern.permute.xlu1 %v2028_v24 }
  0x68   :  { %520 = vperm.xlu1 %1913, %v250_v13   ;;  %659 = vperm.xlu0 %1918, %v625_v39  }
  0x6c   :  { %1914 = vset.pattern.permute.xlu1 %v2027_v2  ;;  %833 = vperm.xlu0 %1918, %v1542_v46  }
  0x6d   :  { %471 = vperm.xlu1 %1914, %v259_v37  }
  0x70   :  { %843 = vperm.xlu0 %1918, %v1544_v60  }
  0x71   :  { %1916 = vset.pattern.permute.xlu1 %v2028_v24 }
  0x72   :  { %568 = vperm.xlu1 %1916, %v257_v25   ;;  %v420_v25 = vshrl.u32 %v419_v15, 7 }
  0x74   :  { %v533_v43 = vsub.s32 1, %v420_v25  ;;  %853 = vperm.xlu0 %1918, %v1546_v6  }
  0x76   :  { %572 = vperm.xlu1 %1916, %v258_v19  }
  0x7a   :  { %528 = vperm.xlu1 %1916, %v252_v34   ;;  %v421_v34 = vsub.s32 0, %v420_v25 }
  0x7e   :  { %576 = vperm.xlu1 %1916, %v259_v37  }
  0x81   :  { %v2292_v50 = vpop.permute.xlu0 %279 }
  0x82   :  { %v2294_v51 = vpop.permute.xlu1 %333  ;;  %1917 = vset.pattern.permute.xlu1 %v2027_v2  ;;  %v126_v2 = vsel %vm2304_vm8, %v2126_v9, %v123_v55 }
  0x83   :  { %1919 = vcosq.f32 %v126_v2  ;;  %629 = vperm.xlu1 %1917, %v619_v21   ;;  %v1548_v21 = vld [vmem:[%s2815_s7 + $0x70] sm:$0xff] }
  0x84   :  { %1921 = vsinq.f32 %v126_v2  ;;  %v626_v2 = vld [vmem:[%s2815_s7 + $0x38] sm:$0xff]  ;;  %863 = vperm.xlu0 %1918, %v1548_v21   ;;  %v1595_v21 = vld [vmem:[%s2815_s7 + $0xe8] sm:$0xff] }
  0x85   :  { %v2298_v24 = vpop.permute.xlu0 %284 }
  0x86   :  { %v2300_v53 = vpop.permute.xlu1 %338  ;;  %v324_v47 = vmul.f32 %v2346_v16, %v2298_v24  ;;  %v323_v24 = vmul.f32 %v2346_v16, %v2292_v50 }
  0x87   :  { %639 = vperm.xlu1 %1917, %v621_v26   ;;  %v1547_v26 = vld [vmem:[%s2815_s7 + $0x68] sm:$0xff] }
  0x88   :  { %v372_v63 = vadd.f32 %v2300_v53, %v324_v47  ;;  %v371_v53 = vadd.f32 %v2294_v51, %v323_v24  ;;  %v1545_v51 = vld [vmem:[%s2815_s7 + $0x58] sm:$0xff] }
  0x89   :  { %v2312_v57 = vpop.permute.xlu0 %381 }
  0x8a   :  { %v2310_v56 = vpop.permute.xlu1 %386 }
  0x8b   :  { %644 = vperm.xlu1 %1917, %v622_v36   ;;  %v1570_v36 = vld [vmem:[%s2815_s7 + $0xa0] sm:$0xff] }
  0x8d   :  { %v2319_v59 = vpop.permute.xlu0 %289  ;;  %v1920_v5 = vpop.eup %1919 }
  0x8e   :  { %v2317_v58 = vpop.permute.xlu1 %294  ;;  %v1922_v7 = vpop.eup %1921  ;;  %v137_v14 = vxor.u32 2147483648, %v1920_v5  ;;  %v325_v39 = vmul.f32 %v2346_v16, %v2319_v59 }
  0x8f   :  { %v134_v12 = vxor.u32 2147483648, %v1922_v7  ;;  %654 = vperm.xlu1 %1917, %v624_v44  }
  0x90   :  { %v138_v22 = vsel %vm136_vm11, %v137_v14, %v1922_v7  ;;  %v242_v27 = vsel %vm240_vm13, %v137_v14, %v1922_v7 }
  0x91   :  { %v2328_v62 = vpop.permute.xlu0 %441  ;;  %v135_v20 = vsel %vm133_vm10, %v1920_v5, %v134_v12  ;;  %v239_v19 = vsel %vm237_vm12, %v1920_v5, %v134_v12 }
  0x92   :  { %v2326_v61 = vpop.permute.xlu1 %446  ;;  %v139_v30 = vsel %vm132_vm14, %v135_v20, %v138_v22  ;;  %v243_v35 = vsel %vm236_vm15, %v239_v19, %v242_v27 }
  0x93   :  { %v140_v37 = vsel %vm130_vm0, nan, %v139_v30  ;;  %v244_v40 = vsel %vm130_vm0, nan, %v243_v35  ;;  %664 = vperm.xlu1 %1917, %v626_v2   ;;  %v1567_v35 = vld [vmem:[%s2815_s7 + $0x88] sm:$0xff]  ;;  %v1590_v2 = vld [vmem:[%s2815_s7 + $0xc0] sm:$0xff] }
  0x94   :  { %v2375_v42 = vrot.slane %v140_v37, %v421_v34  ;;  %v2385_v48 = vrot.slane %v244_v40, %v421_v34  ;;  %v2393_v55 = vrot.slane %v140_v37, %v533_v43  ;;  %v2408_v0 = vrot.slane %v244_v40, %v533_v43  ;;  %v1568_v34 = vld [vmem:[%s2815_s7 + $0x90] sm:$0xff] }
  0x95   :  { %v2337_v3 = vpop.permute.xlu0 %343  ;;  %v1572_v43 = vld [vmem:[%s2815_s7 + $0xb0] sm:$0xff] }
  0x96   :  { %v2335_v1 = vpop.permute.xlu1 %348  ;;  %v424_v54 = vmul.f32 %v2375_v42, %v2310_v56  ;;  %v484_v56 = vmul.f32 %v2385_v48, %v2326_v61  ;;  %v423_v4 = vmul.f32 %v2375_v42, %v2312_v57  ;;  %v483_v61 = vmul.f32 %v2385_v48, %v2328_v62 }
  0x97   :  { %838 = vperm.xlu1 %1917, %v1543_v8   ;;  %v373_v59 = vadd.f32 %v2337_v3, %v325_v39 }
  0x98   :  { %v432_v5 = vadd.f32 %v424_v54, %v372_v63  ;;  %v431_v15 = vadd.f32 %v423_v4, %v371_v53  ;;  %v1571_v54 = vld [vmem:[%s2815_s7 + $0xa8] sm:$0xff]  ;;  %v326_v63 = vmul.f32 %v2346_v16, %v2317_v58 }
  0x99   :  { %v2341_v11 = vpop.permute.xlu0 %391 }
  0x9a   :  { %v2339_v10 = vpop.permute.xlu1 %396  ;;  %v492_v57 = vadd.f32 %v484_v56, %v432_v5  ;;  %v425_v47 = vmul.f32 %v2375_v42, %v2341_v11  ;;  %v1573_v11 = vld [vmem:[%s2815_s7 + $0xb8] sm:$0xff]  ;;  %v1592_v5 = vld [vmem:[%s2815_s7 + $0xd0] sm:$0xff] }
  0x9b   :  { %848 = vperm.xlu1 %1917, %v1545_v51   ;;  %v426_v56 = vmul.f32 %v2375_v42, %v2339_v10  ;;  %v1591_v10 = vld [vmem:[%s2815_s7 + $0xc8] sm:$0xff]  ;;  %v1596_v51 = vld [vmem:[%s2815_s7 + $0xf0] sm:$0xff] }
  0x9c   :  { %v433_v60 = vadd.f32 %v425_v47, %v373_v59 }
  0x9d   :  { %v305_v13 = vpop.permute.xlu0 %304 }
  0x9e   :  { %v328_v18 = vmul.f32 %v2346_v16, %v305_v13 }
  0x9f   :  { %v505_v17 = vpop.permute.xlu1 %504  ;;  %858 = vperm.xlu1 %1917, %v1547_v26  }
  0xa0   :  { %v536_v50 = vmul.f32 %v2393_v55, %v505_v17 }
  0xa1   :  { %v359_v28 = vpop.permute.xlu0 %358 }
  0xa2   :  { %v2362_v32 = vadd.f32 %v359_v28, %v328_v18  ;;  %v544_v17 = vadd.f32 %v536_v50, %v492_v57  ;;  %v491_v18 = vadd.f32 %v483_v61, %v431_v15  ;;  %v1566_v28 = vld [vmem:[%s2815_s7 + $0x80] sm:$0xff]  ;;  %v1593_v15 = vld [vmem:[%s2815_s7 + $0xd8] sm:$0xff] }
  0xa3   :  { %1036 = vperm.xlu0 %1918, %v1566_v28   ;;  %868 = vperm.xlu1 %1917, %v1549_v29  }
  0xa4   :  { %v2364_v33 = vpop.permute.xlu1 %299 }
  0xa5   :  { %v315_v38 = vpop.permute.xlu0 %314 }
  0xa6   :  { %v330_v9 = vmul.f32 %v2346_v16, %v315_v38 }
  0xa7   :  { %1046 = vperm.xlu0 %1918, %v1568_v34   ;;  %1041 = vperm.xlu1 %1917, %v1567_v35  }
  0xa8   :  { %v2373_v41 = vpop.permute.xlu1 %451 }
  0xa9   :  { %v369_v45 = vpop.permute.xlu0 %368  ;;  %v485_v3 = vmul.f32 %v2385_v48, %v2373_v41  ;;  %v374_v41 = vadd.f32 %v2335_v1, %v326_v63  ;;  %v1594_v1 = vld [vmem:[%s2815_s7 + $0xe0] sm:$0xff] }
  0xaa   :  { %v2387_v49 = vadd.f32 %v369_v45, %v330_v9  ;;  %v1569_v9 = vld [vmem:[%s2815_s7 + $0x98] sm:$0xff] }
  0xab   :  { %1056 = vperm.xlu0 %1918, %v1570_v36   ;;  %1051 = vperm.xlu1 %1917, %v1569_v9   ;;  %v493_v53 = vadd.f32 %v485_v3, %v433_v60  ;;  %v434_v61 = vadd.f32 %v426_v56, %v374_v41  ;;  %v327_v9 = vmul.f32 %v2346_v16, %v2364_v33 }
  0xac   :  { %v2389_v52 = vpop.permute.xlu1 %456 }
  0xad   :  { %v2400_v31 = vpop.permute.xlu0 %476 }
  0xae   :  { %v490_v34 = vmul.f32 %v2385_v48, %v2400_v31 }
  0xaf   :  { %1066 = vperm.xlu0 %1918, %v1572_v43   ;;  %1061 = vperm.xlu1 %1917, %v1571_v54  }
  0xb1   :  { %v557_v7 = vpop.permute.xlu1 %556 }
  0xb2   :  { %v588_v12 = vmul.f32 %v2408_v0, %v557_v7  ;;  %v501_v14 = vpop.permute.xlu0 %500  ;;  %v486_v7 = vmul.f32 %v2385_v48, %v2389_v52 }
  0xb3   :  { %v535_v13 = vmul.f32 %v2393_v55, %v501_v14  ;;  %1239 = vperm.xlu0 %1918, %v1590_v2   ;;  %1071 = vperm.xlu1 %1917, %v1573_v11  }
  0xb4   :  { %v596_v20 = vadd.f32 %v588_v12, %v544_v17  ;;  %v494_v12 = vadd.f32 %v486_v7, %v434_v61 }
  0xb5   :  { %v543_v23 = vadd.f32 %v535_v13, %v491_v18 }
  0xb6   :  { %v2427_v62 = vpop.permute.xlu1 %353  ;;  %v553_v22 = vpop.permute.xlu0 %552  ;;  %1923 = vtanh.f32 %v596_v20 }
  0xb7   :  { %v587_v25 = vmul.f32 %v2408_v0, %v553_v22  ;;  %1249 = vperm.xlu0 %1918, %v1592_v5   ;;  %1244 = vperm.xlu1 %1917, %v1591_v10   ;;  %v1423_v22 = vld [vmem:[%s2817_s9] sm:$0x3] }
  0xb9   :  { %v595_v19 = vadd.f32 %v587_v25, %v543_v23  ;;  %v1597_v23 = vld [vmem:[%s2815_s7 + $0xf8] sm:$0xff] }
  0xba   :  { %v2436_v27 = vpop.permute.xlu1 %401  ;;  %v509_v45 = vpop.permute.xlu0 %508 }
  0xbb   :  { %1925 = vtanh.f32 %v595_v19  ;;  %v537_v50 = vmul.f32 %v2393_v55, %v509_v45  ;;  %1259 = vperm.xlu0 %1918, %v1594_v1   ;;  %1254 = vperm.xlu1 %1917, %v1593_v15   ;;  %v427_v43 = vmul.f32 %v2375_v42, %v2436_v27 }
  0xbd   :  { %v545_v57 = vadd.f32 %v537_v50, %v493_v53 }
  0xbe   :  { %v2444_v30 = vpop.permute.xlu1 %406  ;;  %v561_v4 = vpop.permute.xlu0 %560 }
  0xbf   :  { %v589_v58 = vmul.f32 %v2408_v0, %v561_v4  ;;  %1269 = vperm.xlu0 %1918, %v1596_v51   ;;  %1264 = vperm.xlu1 %1917, %v1595_v21   ;;  %v428_v47 = vmul.f32 %v2375_v42, %v2444_v30  ;;  %v614_v21 = vld [vmem:[%s2814_s6 + $0x18] sm:$0xff] }
  0xc0   :  { %v2455_v38 = vpop.eup %1923 }
  0xc1   :  { %v597_v52 = vadd.f32 %v589_v58, %v545_v57  ;;  %v436_v33 = vadd.f32 %v428_v47, %v2362_v32 }
  0xc2   :  { %v517_v31 = vpop.permute.xlu0 %516 }
  0xc3   :  { %v513_v37 = vpop.permute.xlu1 %512  ;;  %1927 = vtanh.f32 %v597_v52  ;;  %1426 = vperm.xlu0 %1918, %v1423_v22   ;;  %1274 = vperm.xlu1 %1917, %v1597_v23   ;;  %v539_v2 = vmul.f32 %v2393_v55, %v517_v31  ;;  %v616_v22 = vld [vmem:[%s2814_s6 + $0x28] sm:$0xff]  ;;  %v617_v23 = vld [vmem:[%s2814_s6 + $0x30] sm:$0xff] }
  0xc4   :  { %v538_v6 = vmul.f32 %v2393_v55, %v513_v37 }
  0xc5   :  { %v2462_v40 = vpop.eup %1925 }
  0xc6   :  { %v1811_v44 = vpack.c.bf16 %v2455_v38, %v2462_v40  ;;  %v546_v13 = vadd.f32 %v538_v6, %v494_v12 }
  0xc8   :  { %v2469_v46 = vpop.permute.xlu1 %309  ;;  %1812 = vmatprep.subr.bf16.mxu0 %v1811_v44 }
  0xc9   :  { %1814 = vmatpush3.bf16.msra.mxu0 %v1811_v44  ;;  %v375_v44 = vadd.f32 %v2427_v62, %v327_v9  ;;  %v329_v63 = vmul.f32 %v2346_v16, %v2469_v46 }
  0xcc   :  { %v462_v24 = vpop.permute.xlu1 %461 }
  0xcd   :  { %v2520_v19 = vpop.eup %1927  ;;  %v487_v45 = vmul.f32 %v2385_v48, %v462_v24  ;;  %v525_v24 = vpop.permute.xlu0 %524 }
  0xce   :  { %v541_v46 = vmul.f32 %v2393_v55, %v525_v24 }
  0xd0   :  { %v467_v8 = vpop.permute.xlu1 %466 }
  0xd1   :  { %v488_v60 = vmul.f32 %v2385_v48, %v467_v8  ;;  %v581_v58 = vpop.permute.xlu0 %580 }
  0xd3   :  { %v496_v56 = vadd.f32 %v488_v60, %v436_v33 }
  0xd5   :  { %v565_v14 = vpop.permute.xlu1 %564 }
  0xd6   :  { %v590_v17 = vmul.f32 %v2408_v0, %v565_v14 }
  0xd8   :  { %v598_v18 = vadd.f32 %v590_v17, %v546_v13 }
  0xda   :  { %1929 = vtanh.f32 %v598_v18  ;;  %v364_v20 = vpop.permute.xlu1 %363  ;;  %v613_v18 = vld [vmem:[%s2814_s6 + $0x10] sm:$0xff] }
  0xdb   :  { %v377_v50 = vadd.f32 %v364_v20, %v329_v63  ;;  %v615_v20 = vld [vmem:[%s2814_s6 + $0x20] sm:$0xff] }
  0xde   :  { %v412_v25 = vpop.permute.xlu1 %411 }
  0xdf   :  { %v429_v30 = vmul.f32 %v2375_v42, %v412_v25  ;;  %v618_v25 = vld [vmem:[%s2814_s6 + $0x38] sm:$0xff] }
  0xe1   :  { %v437_v8 = vadd.f32 %v429_v30, %v377_v50 }
  0xe2   :  { %v417_v26 = vpop.permute.xlu1 %416 }
  0xe3   :  { %v430_v28 = vmul.f32 %v2375_v42, %v417_v26  ;;  %v594_v42 = vmul.f32 %v2408_v0, %v581_v58  ;;  %v1534_v26 = vld [vmem:[%s2814_s6 + $0x40] sm:$0xff] }
  0xe4   :  { %v2523_v29 = vpop.eup %1929  ;;  %1724 = vmatprep.mubr.msk.f32.mxu1 %vm667_vm9, %v1534_v26 }
  0xe5   :  { %v438_v35 = vadd.f32 %v430_v28, %v2387_v49  ;;  %v1815_v36 = vpack.c.bf16 %v2523_v29, %v2520_v19  ;;  %v435_v49 = vadd.f32 %v427_v43, %v375_v44 }
  0xe7   :  { %v521_v37 = vpop.permute.xlu1 %520  ;;  %1816 = vmatprep.subr.bf16.mxu0 %v1815_v36  ;;  %v498_v39 = vadd.f32 %v490_v34, %v438_v35  ;;  %v495_v54 = vadd.f32 %v487_v45, %v435_v49  ;;  %v635_v35 = vpop.permute.xlu0 %634 }
  0xe8   :  { %1818 = vmatpush3.bf16.msra.mxu0 %v1815_v36  ;;  %v540_v27 = vmul.f32 %v2393_v55, %v521_v37 }
  0xe9   :  { %v547_v11 = vadd.f32 %v539_v2, %v495_v54 }
  0xea   :  { %v548_v41 = vadd.f32 %v540_v27, %v496_v56 }
  0xeb   :  { %v650_v47 = vpop.permute.xlu0 %649 }
  0xec   :  { %v472_v59 = vpop.permute.xlu1 %471 }
  0xed   :  { %v489_v7 = vmul.f32 %v2385_v48, %v472_v59 }
  0xef   :  { %v497_v61 = vadd.f32 %v489_v7, %v437_v8 }
  0xf1   :  { %v569_v3 = vpop.permute.xlu1 %568  ;;  %v549_v12 = vadd.f32 %v541_v46, %v497_v61 }
  0xf2   :  { %v591_v62 = vmul.f32 %v2408_v0, %v569_v3 }
  0xf4   :  { %v599_v4 = vadd.f32 %v591_v62, %v547_v11  ;;  %v660_v11 = vpop.permute.xlu0 %659 }
  0xf5   :  { %v573_v5 = vpop.permute.xlu1 %572 }
  0xf6   :  { %v592_v32 = vmul.f32 %v2408_v0, %v573_v5  ;;  %1931 = vtanh.f32 %v599_v4 }
  0xf8   :  { %v600_v53 = vadd.f32 %v592_v32, %v548_v41 }
  0xf9   :  { %v529_v10 = vpop.permute.xlu1 %528 }
  0xfa   :  { %1933 = vtanh.f32 %v600_v53  ;;  %v542_v16 = vmul.f32 %v2393_v55, %v529_v10 }
  0xfc   :  { %v550_v6 = vadd.f32 %v542_v16, %v498_v39 }
  0xfd   :  { %v577_v1 = vpop.permute.xlu1 %576 }
  0xfe   :  { %v602_v57 = vadd.f32 %v594_v42, %v550_v6  ;;  %v593_v48 = vmul.f32 %v2408_v0, %v577_v1  ;;  %v612_v0 = vld [vmem:[%s2814_s6 + $0x8] sm:$0xff]  ;;  %v1536_v1 = vld [vmem:[%s2814_s6 + $0x50] sm:$0xff] }
  0xff   :  { %v1535_v6 = vld [vmem:[%s2814_s6 + $0x48] sm:$0xff] }
 0x100   :  { %v601_v52 = vadd.f32 %v593_v48, %v549_v12  ;;  %1935 = vtanh.f32 %v602_v57  ;;  %v2552_v14 = vpop.eup %1931  ;;  %v1537_v57 = vld [vmem:[%s2814_s6 + $0x58] sm:$0xff]  ;;  %v1538_v12 = vld [vmem:[%s2814_s6 + $0x60] sm:$0xff]  ;;  %v1539_v48 = vld [vmem:[%s2814_s6 + $0x68] sm:$0xff] }
 0x102   :  { %1937 = vtanh.f32 %v601_v52  ;;  %v630_v28 = vpop.permute.xlu1 %629  ;;  %v1540_v52 = vld [vmem:[%s2814_s6 + $0x70] sm:$0xff] }
 0x104   :  { %v2554_v15 = vpop.eup %1933 }
 0x105   :  { %v1819_v13 = vpack.c.bf16 %v2554_v15, %v2552_v14 }
 0x106   :  { %v640_v34 = vpop.permute.xlu1 %639 }
 0x107   :  { %1820 = vmatprep.subr.bf16.mxu0 %v1819_v13 }
 0x108   :  { %1822 = vmatpush3.bf16.msra.mxu0 %v1819_v13 }
 0x10a   :  { %v2558_v55 = vpop.eup %1935  ;;  %v645_v36 = vpop.permute.xlu1 %644 }
 0x10c   :  { %v2560_v17 = vpop.eup %1937 }
 0x10d   :  { %v1823_v51 = vpack.c.bf16 %v2558_v55, %v2560_v17 }
 0x10e   :  { %v655_v59 = vpop.permute.xlu1 %654 }
 0x10f   :  { %1824 = vmatprep.subr.bf16.mxu0 %v1823_v51 }
 0x110   :  { %1826 = vmatpush3.bf16.msra.mxu0 %v1823_v51 }
 0x112   :  { %v665_v33 = vpop.permute.xlu1 %664 }
 0x113   :  { %1697 = vmatmul.mubr.msk.f32.vlgmr.msra.gmra.mrb[0].mxu0 %vm667_vm9, %v612_v0 }
 0x114   :  { %1699 = vmatprep.mubr.msk.f32.mxu0 %vm667_vm9, %v613_v18 }
 0x116   :  { %v839_v13 = vpop.permute.xlu1 %838 }
 0x117   :  { %1700 = vmatmul.mubr.msk.f32.gmra.mrb[2].mxu0 %vm667_vm9, %v614_v21 }
 0x118   :  { %1702 = vmatprep.mubr.msk.f32.mxu0 %vm667_vm9, %v615_v20 }
 0x11b   :  { %1703 = vmatmul.mubr.msk.f32.gmra.mrb[4].mxu0 %vm667_vm9, %v616_v22 }
 0x11c   :  { %1705 = vmatprep.mubr.msk.f32.mxu0 %vm667_vm9, %v617_v23 }
 0x11f   :  { %1706 = vmatmul.mubr.msk.f32.gmra.mrb[6].mxu0 %vm667_vm9, %v618_v25 }
 0x1e6   :  { %v1698_v37 = vpop.f32.mrb[0].mxu0 }
 0x1e7   :  { %v764_v39 = vadd.f32 %v1698_v37, %v635_v35  ;;  %v758_v9 = vpop.f32.mrb[1].mxu0 }
 0x1e8   :  { %v759_v43 = vadd.f32 %v758_v9, %v630_v28 }
 0x1e9   :  { %1939 = vtanh.f32 %v764_v39 }
 0x1ea   :  { %1941 = vtanh.f32 %v759_v43  ;;  %v1701_v44 = vpop.f32.mrb[2].mxu0 }
 0x1eb   :  { %v774_v45 = vadd.f32 %v1701_v44, %v645_v36  ;;  %v768_v31 = vpop.f32.mrb[3].mxu0 }
 0x1ec   :  { %v769_v49 = vadd.f32 %v768_v31, %v640_v34 }
 0x1ed   :  { %1943 = vtanh.f32 %v774_v45 }
 0x1ee   :  { %1945 = vtanh.f32 %v769_v49  ;;  %v1704_v54 = vpop.f32.mrb[4].mxu0 }
 0x1ef   :  { %v784_v2 = vadd.f32 %v1704_v54, %v655_v59  ;;  %v778_v60 = vpop.f32.mrb[5].mxu0 }
 0x1f0   :  { %v779_v3 = vadd.f32 %v778_v60, %v650_v47 }
 0x1f1   :  { %1947 = vtanh.f32 %v784_v2 }
 0x1f2   :  { %1949 = vtanh.f32 %v779_v3  ;;  %v1707_v27 = vpop.f32.mrb[6].mxu0 }
 0x1f3   :  { %v1940_v62 = vpop.eup %1939  ;;  %v794_v24 = vadd.f32 %v1707_v27, %v665_v33  ;;  %v788_v63 = vpop.f32.mrb[7].mxu0 }
 0x1f4   :  { %v1942_v56 = vpop.eup %1941  ;;  %v789_v30 = vadd.f32 %v788_v63, %v660_v11  ;;  %v2597_v4 = vadd.f32 %v1940_v62, %v2455_v38 }
 0x1f5   :  { %1951 = vtanh.f32 %v794_v24  ;;  %v2600_v5 = vadd.f32 %v1942_v56, %v2462_v40 }
 0x1f6   :  { %1953 = vtanh.f32 %v789_v30 }
 0x1f7   :  { %v1944_v50 = vpop.eup %1943  ;;  %v1827_v41 = vpack.c.bf16 %v2597_v4, %v2600_v5 }
 0x1f8   :  { %v1946_v7 = vpop.eup %1945  ;;  %v2605_v32 = vadd.f32 %v1944_v50, %v2523_v29 }
 0x1f9   :  { %1828 = vmatprep.subr.bf16.mxu1 %v1827_v41  ;;  %v2608_v8 = vadd.f32 %v1946_v7, %v2520_v19 }
 0x1fa   :  { %1830 = vmatpush3.bf16.msra.mxu1 %v1827_v41 }
 0x1fb   :  { %v1948_v38 = vpop.eup %1947  ;;  %v1831_v53 = vpack.c.bf16 %v2605_v32, %v2608_v8 }
 0x1fc   :  { %v1950_v40 = vpop.eup %1949  ;;  %v2613_v58 = vadd.f32 %v1948_v38, %v2554_v15  ;;  %v1558_v15 = vld [vmem:[%s2814_s6 + $0x80] sm:$0xff]  ;;  %v1560_v38 = vld [vmem:[%s2814_s6 + $0x90] sm:$0xff] }
 0x1fd   :  { %1832 = vmatprep.subr.bf16.mxu1 %v1831_v53  ;;  %v2616_v10 = vadd.f32 %v1950_v40, %v2552_v14  ;;  %v1541_v14 = vld [vmem:[%s2814_s6 + $0x78] sm:$0xff]  ;;  %1752 = vmatprep.mubr.msk.f32.mxu0 %vm667_vm9, %v1558_v15  ;;  %v1562_v40 = vld [vmem:[%s2814_s6 + $0xa0] sm:$0xff] }
 0x1fe   :  { %1834 = vmatpush3.bf16.msra.mxu1 %v1831_v53  ;;  %v1561_v53 = vld [vmem:[%s2814_s6 + $0x98] sm:$0xff] }
 0x1ff   :  { %v1952_v29 = vpop.eup %1951  ;;  %v1835_v61 = vpack.c.bf16 %v2613_v58, %v2616_v10 }
 0x200   :  { %v1954_v19 = vpop.eup %1953  ;;  %v2621_v16 = vadd.f32 %v1952_v29, %v2558_v55  ;;  %v834_v55 = vpop.permute.xlu0 %833  ;;  %v1565_v29 = vld [vmem:[%s2814_s6 + $0xb8] sm:$0xff] }
 0x201   :  { %1836 = vmatprep.subr.bf16.mxu1 %v1835_v61  ;;  %v2624_v46 = vadd.f32 %v1954_v19, %v2560_v17  ;;  %v849_v17 = vpop.permute.xlu1 %848 }
 0x202   :  { %1838 = vmatpush3.bf16.msra.mxu1 %v1835_v61  ;;  %v1582_v61 = vld [vmem:[%s2814_s6 + $0xc0] sm:$0xff] }
 0x203   :  { %v1839_v42 = vpack.c.bf16 %v2621_v16, %v2624_v46 }
 0x204   :  { %v844_v0 = vpop.permute.xlu0 %843 }
 0x205   :  { %1840 = vmatprep.subr.bf16.mxu1 %v1839_v42  ;;  %v859_v26 = vpop.permute.xlu1 %858 }
 0x206   :  { %1842 = vmatpush3.bf16.msra.mxu1 %v1839_v42 }
 0x208   :  { %v854_v34 = vpop.permute.xlu0 %853 }
 0x209   :  { %1725 = vmatmul.mubr.msk.f32.vlgmr.msra.gmra.mrb[0].mxu1 %vm667_vm9, %v1535_v6  ;;  %v869_v9 = vpop.permute.xlu1 %868 }
 0x20a   :  { %1727 = vmatprep.mubr.msk.f32.mxu1 %vm667_vm9, %v1536_v1 }
 0x20c   :  { %v864_v45 = vpop.permute.xlu0 %863 }
 0x20d   :  { %1728 = vmatmul.mubr.msk.f32.gmra.mrb[2].mxu1 %vm667_vm9, %v1537_v57  ;;  %v1042_v19 = vpop.permute.xlu1 %1041 }
 0x20e   :  { %1730 = vmatprep.mubr.msk.f32.mxu1 %vm667_vm9, %v1538_v12 }
 0x211   :  { %1731 = vmatmul.mubr.msk.f32.gmra.mrb[4].mxu1 %vm667_vm9, %v1539_v48 }
 0x212   :  { %1733 = vmatprep.mubr.msk.f32.mxu1 %vm667_vm9, %v1540_v52 }
 0x215   :  { %1734 = vmatmul.mubr.msk.f32.gmra.mrb[6].mxu1 %vm667_vm9, %v1541_v14 }
 0x216   :  { %1780 = vmatprep.mubr.msk.f32.mxu1 %vm667_vm9, %v1582_v61 }
 0x2dc   :  { %v1726_v51 = vpop.f32.mrb[0].mxu1 }
 0x2dd   :  { %v967_v18 = vadd.f32 %v1726_v51, %v839_v13  ;;  %v961_v21 = vpop.f32.mrb[1].mxu1 }
 0x2de   :  { %v962_v20 = vadd.f32 %v961_v21, %v834_v55 }
 0x2df   :  { %1955 = vtanh.f32 %v967_v18 }
 0x2e0   :  { %1957 = vtanh.f32 %v962_v20  ;;  %v1729_v22 = vpop.f32.mrb[2].mxu1 }
 0x2e1   :  { %v977_v23 = vadd.f32 %v1729_v22, %v849_v17  ;;  %v971_v25 = vpop.f32.mrb[3].mxu1 }
 0x2e2   :  { %v972_v28 = vadd.f32 %v971_v25, %v844_v0 }
 0x2e3   :  { %1959 = vtanh.f32 %v977_v23 }
 0x2e4   :  { %1961 = vtanh.f32 %v972_v28  ;;  %v1732_v35 = vpop.f32.mrb[4].mxu1 }
 0x2e5   :  { %v987_v36 = vadd.f32 %v1732_v35, %v859_v26  ;;  %v981_v37 = vpop.f32.mrb[5].mxu1 }
 0x2e6   :  { %v982_v39 = vadd.f32 %v981_v37, %v854_v34 }
 0x2e7   :  { %1963 = vtanh.f32 %v987_v36 }
 0x2e8   :  { %1965 = vtanh.f32 %v982_v39  ;;  %v1735_v43 = vpop.f32.mrb[6].mxu1 }
 0x2e9   :  { %v1956_v44 = vpop.eup %1955  ;;  %v997_v31 = vadd.f32 %v1735_v43, %v869_v9  ;;  %v991_v59 = vpop.f32.mrb[7].mxu1 }
 0x2ea   :  { %v1958_v49 = vpop.eup %1957  ;;  %v992_v47 = vadd.f32 %v991_v59, %v864_v45  ;;  %v2661_v54 = vadd.f32 %v1956_v44, %v2597_v4 }
 0x2eb   :  { %1967 = vtanh.f32 %v997_v31  ;;  %v2664_v2 = vadd.f32 %v1958_v49, %v2600_v5 }
 0x2ec   :  { %1969 = vtanh.f32 %v992_v47 }
 0x2ed   :  { %v1960_v60 = vpop.eup %1959  ;;  %v1843_v3 = vpack.c.bf16 %v2661_v54, %v2664_v2 }
 0x2ee   :  { %v1962_v33 = vpop.eup %1961  ;;  %v2669_v27 = vadd.f32 %v1960_v60, %v2605_v32 }
 0x2ef   :  { %1844 = vmatprep.subr.bf16.mxu0 %v1843_v3  ;;  %v2672_v62 = vadd.f32 %v1962_v33, %v2608_v8  ;;  %v1559_v8 = vld [vmem:[%s2814_s6 + $0x88] sm:$0xff] }
 0x2f0   :  { %1846 = vmatpush3.bf16.msra.mxu0 %v1843_v3 }
 0x2f1   :  { %v1964_v11 = vpop.eup %1963  ;;  %v1847_v24 = vpack.c.bf16 %v2669_v27, %v2672_v62 }
 0x2f2   :  { %v1966_v63 = vpop.eup %1965  ;;  %v2677_v56 = vadd.f32 %v1964_v11, %v2613_v58  ;;  %v1563_v58 = vld [vmem:[%s2814_s6 + $0xa8] sm:$0xff]  ;;  %v1584_v11 = vld [vmem:[%s2814_s6 + $0xd0] sm:$0xff] }
 0x2f3   :  { %1848 = vmatprep.subr.bf16.mxu0 %v1847_v24  ;;  %v2680_v30 = vadd.f32 %v1966_v63, %v2616_v10  ;;  %v1564_v10 = vld [vmem:[%s2814_s6 + $0xb0] sm:$0xff]  ;;  %v1586_v63 = vld [vmem:[%s2814_s6 + $0xe0] sm:$0xff] }
 0x2f4   :  { %1850 = vmatpush3.bf16.msra.mxu0 %v1847_v24  ;;  %v1585_v24 = vld [vmem:[%s2814_s6 + $0xd8] sm:$0xff] }
 0x2f5   :  { %v1968_v4 = vpop.eup %1967  ;;  %v1851_v5 = vpack.c.bf16 %v2677_v56, %v2680_v30 }
 0x2f6   :  { %v1970_v50 = vpop.eup %1969  ;;  %v2685_v41 = vadd.f32 %v1968_v4, %v2621_v16  ;;  %v1037_v16 = vpop.permute.xlu0 %1036  ;;  %v1589_v4 = vld [vmem:[%s2814_s6 + $0xf8] sm:$0xff] }
 0x2f7   :  { %1852 = vmatprep.subr.bf16.mxu0 %v1851_v5  ;;  %v2688_v7 = vadd.f32 %v1970_v50, %v2624_v46  ;;  %v1052_v46 = vpop.permute.xlu1 %1051  ;;  %v2037_v50 = vmov 0.0  }
 0x2f8   :  { %1854 = vmatpush3.bf16.msra.mxu0 %v1851_v5  ;;  %v2035_v5 = vmov 0.0|0.0  }
 0x2f9   :  { %v1855_v32 = vpack.c.bf16 %v2685_v41, %v2688_v7 }
 0x2fa   :  { %v1047_v6 = vpop.permute.xlu0 %1046 }
 0x2fb   :  { %1856 = vmatprep.subr.bf16.mxu0 %v1855_v32  ;;  %v1062_v15 = vpop.permute.xlu1 %1061 }
 0x2fc   :  { %1858 = vmatpush3.bf16.msra.mxu0 %v1855_v32 }
 0x2fd   :  { %1875 = vmatprep.subr.bf16.mxu0 %v2035_v5 }
 0x2fe   :  { %v1057_v55 = vpop.permute.xlu0 %1056 }
 0x2ff   :  { %1753 = vmatmul.mubr.msk.f32.vlgmr.msra.gmra.mrb[8].mxu0 %vm667_vm9, %v1559_v8  ;;  %v1072_v21 = vpop.permute.xlu1 %1071 }
 0x300   :  { %1755 = vmatprep.mubr.msk.f32.mxu0 %vm667_vm9, %v1560_v38 }
 0x302   :  { %v1067_v23 = vpop.permute.xlu0 %1066 }
 0x303   :  { %1756 = vmatmul.mubr.msk.f32.gmra.mrb[10].mxu0 %vm667_vm9, %v1561_v53 }
 0x304   :  { %1758 = vmatprep.mubr.msk.f32.mxu0 %vm667_vm9, %v1562_v40 }
 0x307   :  { %1759 = vmatmul.mubr.msk.f32.gmra.mrb[12].mxu0 %vm667_vm9, %v1563_v58 }
 0x308   :  { %1761 = vmatprep.mubr.msk.f32.mxu0 %vm667_vm9, %v1564_v10 }
 0x30b   :  { %1762 = vmatmul.mubr.msk.f32.gmra.mrb[14].mxu0 %vm667_vm9, %v1565_v29 }
 0x30c   :  { %1808 = vmatprep.mubr.msk.f32.mxu0 %vm2036_vm1, %v2037_v50 }
 0x3d2   :  { %v1754_v42 = vpop.f32.mrb[8].mxu0 }
 0x3d3   :  { %v1170_v1 = vadd.f32 %v1754_v42, %v1042_v19  ;;  %v1164_v57 = vpop.f32.mrb[9].mxu0 }
 0x3d4   :  { %v1165_v12 = vadd.f32 %v1164_v57, %v1037_v16 }
 0x3d5   :  { %1971 = vtanh.f32 %v1170_v1 }
 0x3d6   :  { %1973 = vtanh.f32 %v1165_v12  ;;  %v1757_v48 = vpop.f32.mrb[10].mxu0 }
 0x3d7   :  { %v1180_v52 = vadd.f32 %v1757_v48, %v1052_v46  ;;  %v1174_v14 = vpop.f32.mrb[11].mxu0 }
 0x3d8   :  { %v1175_v13 = vadd.f32 %v1174_v14, %v1047_v6 }
 0x3d9   :  { %1975 = vtanh.f32 %v1180_v52 }
 0x3da   :  { %1977 = vtanh.f32 %v1175_v13  ;;  %v1760_v17 = vpop.f32.mrb[12].mxu0 }
 0x3db   :  { %v1190_v51 = vadd.f32 %v1760_v17, %v1062_v15  ;;  %v1184_v0 = vpop.f32.mrb[13].mxu0 }
 0x3dc   :  { %v1185_v18 = vadd.f32 %v1184_v0, %v1057_v55 }
 0x3dd   :  { %1979 = vtanh.f32 %v1190_v51 }
 0x3de   :  { %1981 = vtanh.f32 %v1185_v18  ;;  %v1763_v20 = vpop.f32.mrb[14].mxu0 }
 0x3df   :  { %v1972_v22 = vpop.eup %1971  ;;  %v1200_v25 = vadd.f32 %v1763_v20, %v1072_v21  ;;  %v1194_v26 = vpop.f32.mrb[15].mxu0 }
 0x3e0   :  { %v1974_v28 = vpop.eup %1973  ;;  %v1195_v34 = vadd.f32 %v1194_v26, %v1067_v23  ;;  %v2725_v35 = vadd.f32 %v1972_v22, %v2661_v54 }
 0x3e1   :  { %1983 = vtanh.f32 %v1200_v25  ;;  %v2728_v36 = vadd.f32 %v1974_v28, %v2664_v2 }
 0x3e2   :  { %1985 = vtanh.f32 %v1195_v34 }
 0x3e3   :  { %v1976_v37 = vpop.eup %1975  ;;  %v1859_v39 = vpack.c.bf16 %v2725_v35, %v2728_v36 }
 0x3e4   :  { %v1978_v9 = vpop.eup %1977  ;;  %v2733_v43 = vadd.f32 %v1976_v37, %v2669_v27 }
 0x3e5   :  { %1860 = vmatprep.subr.bf16.mxu1 %v1859_v39  ;;  %v2736_v44 = vadd.f32 %v1978_v9, %v2672_v62  ;;  %v1583_v62 = vld [vmem:[%s2814_s6 + $0xc8] sm:$0xff] }
 0x3e6   :  { %1862 = vmatpush3.bf16.msra.mxu1 %v1859_v39 }
 0x3e7   :  { %v1980_v45 = vpop.eup %1979  ;;  %v1863_v31 = vpack.c.bf16 %v2733_v43, %v2736_v44 }
 0x3e8   :  { %v1982_v59 = vpop.eup %1981  ;;  %v2741_v49 = vadd.f32 %v1980_v45, %v2677_v56  ;;  %v1587_v56 = vld [vmem:[%s2814_s6 + $0xe8] sm:$0xff]  ;;  %v1422_v45 = vld [vmem:[%s2816_s8] sm:$0x3] }
 0x3e9   :  { %1864 = vmatprep.subr.bf16.mxu1 %v1863_v31  ;;  %v2744_v47 = vadd.f32 %v1982_v59, %v2680_v30  ;;  %v1588_v30 = vld [vmem:[%s2814_s6 + $0xf0] sm:$0xff] }
 0x3ea   :  { %1866 = vmatpush3.bf16.msra.mxu1 %v1863_v31 }
 0x3eb   :  { %v1984_v54 = vpop.eup %1983  ;;  %v1867_v2 = vpack.c.bf16 %v2741_v49, %v2744_v47 }
 0x3ec   :  { %v1986_v60 = vpop.eup %1985  ;;  %v2749_v3 = vadd.f32 %v1984_v54, %v2685_v41  ;;  %v1245_v41 = vpop.permute.xlu1 %1244 }
 0x3ed   :  { %1868 = vmatprep.subr.bf16.mxu1 %v1867_v2  ;;  %v2752_v33 = vadd.f32 %v1986_v60, %v2688_v7  ;;  %v1240_v7 = vpop.permute.xlu0 %1239 }
 0x3ee   :  { %1870 = vmatpush3.bf16.msra.mxu1 %v1867_v2 }
 0x3ef   :  { %v1871_v27 = vpack.c.bf16 %v2749_v3, %v2752_v33 }
 0x3f0   :  { %v1255_v32 = vpop.permute.xlu1 %1254 }
 0x3f1   :  { %1872 = vmatprep.subr.bf16.mxu1 %v1871_v27  ;;  %v1250_v38 = vpop.permute.xlu0 %1249 }
 0x3f2   :  { %1874 = vmatpush3.bf16.msra.mxu1 %v1871_v27 }
 0x3f4   :  { %v1265_v19 = vpop.permute.xlu1 %1264 }
 0x3f5   :  { %1781 = vmatmul.mubr.msk.f32.vlgmr.msra.gmra.mrb[8].mxu1 %vm667_vm9, %v1583_v62  ;;  %v1260_v46 = vpop.permute.xlu0 %1259 }
 0x3f6   :  { %1783 = vmatprep.mubr.msk.f32.mxu1 %vm667_vm9, %v1584_v11 }
 0x3f8   :  { %v1275_v12 = vpop.permute.xlu1 %1274 }
 0x3f9   :  { %1784 = vmatmul.mubr.msk.f32.gmra.mrb[10].mxu1 %vm667_vm9, %v1585_v24  ;;  %v1270_v14 = vpop.permute.xlu0 %1269 }
 0x3fa   :  { %1786 = vmatprep.mubr.msk.f32.mxu1 %vm667_vm9, %v1586_v63 }
 0x3fd   :  { %1787 = vmatmul.mubr.msk.f32.gmra.mrb[12].mxu1 %vm667_vm9, %v1587_v56  ;;  %v1427_v31 = vpop.permute.xlu0 %1426 }
 0x3fe   :  { %1789 = vmatprep.mubr.msk.f32.mxu1 %vm667_vm9, %v1588_v30 }
 0x401   :  { %1790 = vmatmul.mubr.msk.f32.gmra.mrb[14].mxu1 %vm667_vm9, %v1589_v4 }
 0x4c8   :  { %v1782_v8 = vpop.f32.mrb[8].mxu1 }
 0x4c9   :  { %v1373_v53 = vadd.f32 %v1782_v8, %v1245_v41  ;;  %v1367_v40 = vpop.f32.mrb[9].mxu1 }
 0x4ca   :  { %v1368_v58 = vadd.f32 %v1367_v40, %v1240_v7 }
 0x4cb   :  { %1987 = vtanh.f32 %v1373_v53 }
 0x4cc   :  { %1989 = vtanh.f32 %v1368_v58  ;;  %v1785_v10 = vpop.f32.mrb[10].mxu1 }
 0x4cd   :  { %v1383_v29 = vadd.f32 %v1785_v10, %v1255_v32  ;;  %v1377_v61 = vpop.f32.mrb[11].mxu1 }
 0x4ce   :  { %v1378_v16 = vadd.f32 %v1377_v61, %v1250_v38 }
 0x4cf   :  { %1991 = vtanh.f32 %v1383_v29 }
 0x4d0   :  { %1993 = vtanh.f32 %v1378_v16  ;;  %v1788_v42 = vpop.f32.mrb[12].mxu1 }
 0x4d1   :  { %v1393_v6 = vadd.f32 %v1788_v42, %v1265_v19  ;;  %v1387_v1 = vpop.f32.mrb[13].mxu1 }
 0x4d2   :  { %v1388_v57 = vadd.f32 %v1387_v1, %v1260_v46 }
 0x4d3   :  { %1995 = vtanh.f32 %v1393_v6 }
 0x4d4   :  { %1997 = vtanh.f32 %v1388_v57  ;;  %v1791_v48 = vpop.f32.mrb[14].mxu1 }
 0x4d5   :  { %v1988_v52 = vpop.eup %1987  ;;  %v1403_v15 = vadd.f32 %v1791_v48, %v1275_v12  ;;  %v1397_v13 = vpop.f32.mrb[15].mxu1 }
 0x4d6   :  { %v1990_v55 = vpop.eup %1989  ;;  %v1398_v17 = vadd.f32 %v1397_v13, %v1270_v14  ;;  %v1415_v51 = vadd.f32 %v1988_v52, %v2725_v35 }
 0x4d7   :  { %1999 = vtanh.f32 %v1403_v15  ;;  %v1414_v0 = vadd.f32 %v1990_v55, %v2728_v36 }
 0x4d8   :  { %2001 = vtanh.f32 %v1398_v17 }
 0x4d9   :  { %v1992_v18 = vpop.eup %1991  ;;  %v1876_v21 = vpack.c.bf16 %v1415_v51, %v1414_v0 }
 0x4da   :  { %v1994_v20 = vpop.eup %1993  ;;  %v1417_v22 = vadd.f32 %v1992_v18, %v2733_v43 }
 0x4db   :  { %1877 = vmatpush3.bf16.msra.mxu0 %v1876_v21  ;;  %v1416_v23 = vadd.f32 %v1994_v20, %v2736_v44 }
 0x4dc   :  { %1878 = vmatprep.subr.bf16.mxu0 %v2035_v5 }
 0x4dd   :  { %v1996_v25 = vpop.eup %1995  ;;  %v1879_v26 = vpack.c.bf16 %v1417_v22, %v1416_v23 }
 0x4de   :  { %v1998_v28 = vpop.eup %1997  ;;  %v1419_v34 = vadd.f32 %v1996_v25, %v2741_v49 }
 0x4df   :  { %1880 = vmatpush3.bf16.msra.mxu0 %v1879_v26  ;;  %v1418_v35 = vadd.f32 %v1998_v28, %v2744_v47 }
 0x4e0   :  { %1881 = vmatprep.subr.bf16.mxu0 %v2035_v5 }
 0x4e1   :  { %v2000_v36 = vpop.eup %1999  ;;  %v1882_v37 = vpack.c.bf16 %v1419_v34, %v1418_v35 }
 0x4e2   :  { %v2002_v39 = vpop.eup %2001  ;;  %v1421_v9 = vadd.f32 %v2000_v36, %v2749_v3 }
 0x4e3   :  { %1883 = vmatpush3.bf16.msra.mxu0 %v1882_v37  ;;  %v1420_v43 = vadd.f32 %v2002_v39, %v2752_v33 }
 0x4e4   :  { %1884 = vmatprep.subr.bf16.mxu0 %v2035_v5 }
 0x4e5   :  { %v1885_v44 = vpack.c.bf16 %v1421_v9, %v1420_v43 }
 0x4e7   :  { %1886 = vmatpush3.bf16.msra.mxu0 %v1885_v44 }
 0x4ea   :  { %1809 = vmatmul.mubr.msk.f32.vlgmr.msra.gmra.mrb[16].mxu0 %vm667_vm9, %v1422_v45 }
 0x5bd   :  { %v1498_v59 = vpop.f32.mrb[16].mxu0 }
 0x5be   :  { %v1499_v49 = vadd.f32 %v1498_v59, %v1427_v31  ;;  %v1810_v47 = vpop.f32.mrb[17].mxu0 }
 0x5c0   :  { %1502 = vst [vmem:[#allocation2] sm:$0x3] %v1499_v49 }
 0x5c1   :  { %2014 = shalt.err (!%p2011_p4)
}
 0x5c2   :  { %s2015_s8 = scalar_lea.hbm %s2818_s10, 32 }
 0x5c3   :  { %p2016_p5 = scmp.ne.s32.totalorder %s2818_s10, %s2015_s8  ;;  %p2019_p6 = scmp.lt.u32.totalorder %s2015_s8, %s2818_s10 }
 0x5c5   :  { %p2021_p7 = pnand %p2019_p6, %p2016_p5 }
 0x5c7   :  { %2024 = shalt.err (!%p2021_p7)
}
 0x5c8   :  { %1512 = dma.vmem_to_hbm [thread:$0]  %s1510_s14, 32, %s2818_s10, [#allocation3]  }
 0x5c9   :  { %2025 = dma.done.wait [#allocation3], 32  }
 0x5ca   :  { %2026 = vsyncadd [#allocation3], 4294967264 }
 0x5cb   :  { %1516 = vsyncpa [#allocation3], 1 }

</bundles_post_ra>
